<compile_context>
chip_gen: v5e
topology: v5e:2x2
jax: 0.10.0
libtpu: 0.0.40
codegen_flags: <defaults>
</compile_context>

<pallas_src>
import jax
import jax.numpy as jnp
from jax.experimental import pallas as pl
from jax.experimental.pallas import tpu as pltpu

# ---------------- configuration (synthetic ModelConfig, conv_size='small') ----------------
Z_SIZE = 64
Z_SLICE = [8, 40]                       # -> input_size = 32
INPUT_SIZE = Z_SLICE[1] - Z_SLICE[0]
HIDDEN = 256                            # fc1/fc2 width for 'small'
VAL_POINTS = 16                         # cfg.io_format.val_points
OUT_PAD = 128                           # lane-dense padded width used inside the final matmul
TB_MAX = 512                            # batch tile: >=256 fills v6e/v7x MXU M dim; 512 amortizes step overhead
BATCH = 8


def _round_up(x, m):
    return (x + m - 1) // m * m


def _pick_tb(B):
    """Batch tile: large enough to amortize per-step overhead / fill the MXU,
    but small enough that large batches still give >=2 grid steps (v7x: 2 TCs)."""
    if B <= TB_MAX:
        return _round_up(B, 8)
    return min(TB_MAX, _round_up((B + 1) // 2, 8))


# ----------------------------------- kernel -----------------------------------
def value_decoder_kernel(z_ref, w1_ref, b1_ref, w2_ref, b2_ref, wf_ref, bf_ref, out_ref):
    # fc1 + relu  (z-slice is folded into zero rows of w1, so full z feeds the MXU)
    x = z_ref[...].astype(jnp.bfloat16)
    h = jnp.dot(x, w1_ref[...], preferred_element_type=jnp.float32) + b1_ref[...]
    h = jnp.maximum(h, 0.0)
    # fc2 + relu
    h = jnp.dot(h.astype(jnp.bfloat16), w2_ref[...], preferred_element_type=jnp.float32) + b2_ref[...]
    h = jnp.maximum(h, 0.0)
    # final_linear: lane-dense 128-wide matmul, but only the first VAL_POINTS columns
    # are real (padded wf/bf columns are zero); store the narrow slice directly.
    y = jnp.dot(h.astype(jnp.bfloat16), wf_ref[...], preferred_element_type=jnp.float32) + bf_ref[...]
    out_ref[...] = y[:, :VAL_POINTS].astype(out_ref.dtype)


# ----------------------------------- wrapper -----------------------------------
def _value_decoder_impl(z, params):
    w1, b1, w2, b2, wf, bf = params
    B = z.shape[0]
    TB = _pick_tb(B)
    grid = (pl.cdiv(B, TB),)
    full = lambda shape: pl.BlockSpec(shape, lambda i: (0,) * len(shape))

    # Advisory cost hint for XLA scheduling around the custom call.
    flops = 2 * B * (Z_SIZE * HIDDEN + HIDDEN * HIDDEN + HIDDEN * OUT_PAD)
    bytes_accessed = (
        B * Z_SIZE * 4                                                     # z (f32)
        + (Z_SIZE * HIDDEN + HIDDEN * HIDDEN + HIDDEN * OUT_PAD) * 2       # bf16 weights
        + (2 * HIDDEN + OUT_PAD) * 4                                       # f32 biases
        + B * VAL_POINTS * 4                                               # narrow f32 output
    )

    return pl.pallas_call(
        value_decoder_kernel,
        out_shape=jax.ShapeDtypeStruct((B, VAL_POINTS), jnp.float32),
        grid_spec=pltpu.PrefetchScalarGridSpec(
            num_scalar_prefetch=0,
            grid=grid,
            in_specs=[
                pl.BlockSpec((TB, Z_SIZE), lambda i: (i, 0)),   # z tile (slice baked into w1)
                full((Z_SIZE, HIDDEN)),                          # w1 (bf16, rows outside z_slice = 0)
                full((1, HIDDEN)),                               # b1 (f32)
                full((HIDDEN, HIDDEN)),                          # w2 (bf16)
                full((1, HIDDEN)),                               # b2 (f32)
                full((HIDDEN, OUT_PAD)),                         # wf (bf16, cols >= VAL_POINTS = 0)
                full((1, OUT_PAD)),                              # bf (f32, padded)
            ],
            # Narrow output: last dim equals full array dim (VAL_POINTS), so the
            # block is legal; HBM writeback is 8x smaller than the padded layout.
            out_specs=pl.BlockSpec((TB, VAL_POINTS), lambda i: (i, 0)),
        ),
        compiler_params=pltpu.CompilerParams(dimension_semantics=("parallel",)),
        cost_estimate=pl.CostEstimate(
            flops=flops, transcendentals=0, bytes_accessed=bytes_accessed),
    )(z, w1, b1, w2, b2, wf, bf)


value_decoder_forward = jax.jit(_value_decoder_impl)


def prepare_params(torch_params):
    """One-time transform of PyTorch-style (out, in) Linear params into kernel layout."""
    w1, b1, w2, b2, wf, bf = torch_params
    # Fold the z-slice into fc1: rows of the (in, out) weight outside [z_slice) are zero.
    w1_full = jnp.zeros((Z_SIZE, HIDDEN), jnp.float32).at[Z_SLICE[0]:Z_SLICE[1], :].set(w1.T)
    # Pad the final layer to a lane-dense 128-wide matmul N; padded cols are exactly zero.
    wf_pad = jnp.zeros((HIDDEN, OUT_PAD), jnp.float32).at[:, :VAL_POINTS].set(wf.T)
    bf_pad = jnp.zeros((1, OUT_PAD), jnp.float32).at[:, :VAL_POINTS].set(bf[None, :])
    return (
        w1_full.astype(jnp.bfloat16), b1[None, :].astype(jnp.float32),
        w2.T.astype(jnp.bfloat16),    b2[None, :].astype(jnp.float32),
        wf_pad.astype(jnp.bfloat16),  bf_pad.astype(jnp.float32),
    )


# ----------------------------- synthetic params / reference -----------------------------
def init_params(key):
    """Deterministic synthetic parameters mirroring nn.Linear shapes (out, in)."""
    ks = jax.random.split(key, 6)
    def lin(kw, kb, out_f, in_f):
        bound = 1.0 / jnp.sqrt(in_f)
        w = jax.random.uniform(kw, (out_f, in_f), jnp.float32, -bound, bound)
        b = jax.random.uniform(kb, (out_f,), jnp.float32, -bound, bound)
        return w, b
    w1, b1 = lin(ks[0], ks[1], HIDDEN, INPUT_SIZE)
    w2, b2 = lin(ks[2], ks[3], HIDDEN, HIDDEN)
    wf, bf = lin(ks[4], ks[5], VAL_POINTS, HIDDEN)
    return w1, b1, w2, b2, wf, bf


def reference_forward(z, torch_params):
    w1, b1, w2, b2, wf, bf = torch_params
    u = z[:, Z_SLICE[0]:Z_SLICE[1]]
    h = jax.nn.relu(u @ w1.T + b1)
    h = jax.nn.relu(h @ w2.T + b2)
    return h @ wf.T + bf


if __name__ == "__main__":
    key = jax.random.PRNGKey(0)
    kz, kz2, kp = jax.random.split(key, 3)
    torch_params = init_params(kp)
    params = prepare_params(torch_params)          # one-time; not per call

    # small batch (typical module use): single grid step, TB=8
    z = jax.random.normal(kz, (BATCH, Z_SIZE), jnp.float32)
    out = jax.block_until_ready(value_decoder_forward(z, params))
    ref = reference_forward(z, torch_params)
    assert out.shape == (BATCH, VAL_POINTS)
    # bf16 weights/activations on the MXU -> loosened tolerance vs f32 reference
    assert jnp.allclose(out, ref, atol=5e-2, rtol=5e-2), "mismatch vs reference (small batch)"

    # larger batch: TB=512 -> grid=(3,) with a partial (256-row) trailing tile;
    # 'parallel' grid steps shard across TensorCores on v7x.
    zb = jax.random.normal(kz2, (1280, Z_SIZE), jnp.float32)
    outb = jax.block_until_ready(value_decoder_forward(zb, params))
    refb = reference_forward(zb, torch_params)
    assert outb.shape == (1280, VAL_POINTS)
    assert jnp.allclose(outb, refb, atol=5e-2, rtol=5e-2), "mismatch vs reference (large batch)"

    print("KERNEL_OK")
</pallas_src>

<mosaic_0001>
module attributes {stable_mosaic.version = 11 : i64} {
  func.func @value_decoder_kernel(%arg0: i32, %arg1: memref<8x64xf32, #tpu.memory_space<vmem>>, %arg2: memref<64x256xbf16, #tpu.memory_space<vmem>>, %arg3: memref<1x256xf32, #tpu.memory_space<vmem>>, %arg4: memref<256x256xbf16, #tpu.memory_space<vmem>>, %arg5: memref<1x256xf32, #tpu.memory_space<vmem>>, %arg6: memref<256x128xbf16, #tpu.memory_space<vmem>>, %arg7: memref<1x128xf32, #tpu.memory_space<vmem>>, %arg8: memref<8x16xf32, #tpu.memory_space<vmem>>) attributes {dimension_semantics = [#tpu.dimension_semantics<parallel>], iteration_bounds = array<i64: 1>, scalar_prefetch = 0 : i64, scratch_operands = 0 : i64, tpu.core_type = #tpu.core_type<tc>, window_params = [{transform_indices = @transform_0, window_bounds = array<i64: 8, 64>}, {pipeline_mode = #tpu.pipeline_mode<synchronous>, transform_indices = @transform_1, window_bounds = array<i64: 64, 256>}, {pipeline_mode = #tpu.pipeline_mode<synchronous>, transform_indices = @transform_2, window_bounds = array<i64: 1, 256>}, {pipeline_mode = #tpu.pipeline_mode<synchronous>, transform_indices = @transform_3, window_bounds = array<i64: 256, 256>}, {pipeline_mode = #tpu.pipeline_mode<synchronous>, transform_indices = @transform_4, window_bounds = array<i64: 1, 256>}, {pipeline_mode = #tpu.pipeline_mode<synchronous>, transform_indices = @transform_5, window_bounds = array<i64: 256, 128>}, {pipeline_mode = #tpu.pipeline_mode<synchronous>, transform_indices = @transform_6, window_bounds = array<i64: 1, 128>}, {transform_indices = @transform_7, window_bounds = array<i64: 8, 16>}]} {
    %c0 = arith.constant 0 : index
    %c0_0 = arith.constant 0 : index
    %0 = vector.load %arg1[%c0, %c0_0] : memref<8x64xf32, #tpu.memory_space<vmem>>, vector<8x64xf32>
    %1 = arith.truncf %0 : vector<8x64xf32> to vector<8x64xbf16>
    %c0_1 = arith.constant 0 : index
    %c0_2 = arith.constant 0 : index
    %2 = vector.load %arg2[%c0_1, %c0_2] : memref<64x256xbf16, #tpu.memory_space<vmem>>, vector<64x256xbf16>
    %cst = arith.constant dense<0.000000e+00> : vector<8x256xf32>
    %3 = tpu.matmul %1, %2, %cst {dimension_numbers = #tpu.dot_dimension_numbers<[1], [0], [0], [1], [0, 0, 1, 1], [], []>} : vector<8x64xbf16>, vector<64x256xbf16>, vector<8x256xf32> -> vector<8x256xf32>
    %c0_3 = arith.constant 0 : index
    %c0_4 = arith.constant 0 : index
    %4 = vector.load %arg3[%c0_3, %c0_4] : memref<1x256xf32, #tpu.memory_space<vmem>>, vector<1x256xf32>
    %5 = vector.broadcast %4 : vector<1x256xf32> to vector<8x256xf32>
    %6 = arith.addf %3, %5 : vector<8x256xf32>
    %cst_5 = arith.constant 0.000000e+00 : f32
    %7 = vector.broadcast %cst_5 : f32 to vector<8x256xf32>
    %8 = arith.maximumf %6, %7 : vector<8x256xf32>
    %9 = arith.truncf %8 : vector<8x256xf32> to vector<8x256xbf16>
    %c0_6 = arith.constant 0 : index
    %c0_7 = arith.constant 0 : index
    %10 = vector.load %arg4[%c0_6, %c0_7] : memref<256x256xbf16, #tpu.memory_space<vmem>>, vector<256x256xbf16>
    %cst_8 = arith.constant dense<0.000000e+00> : vector<8x256xf32>
    %11 = tpu.matmul %9, %10, %cst_8 {dimension_numbers = #tpu.dot_dimension_numbers<[1], [0], [0], [1], [0, 0, 1, 1], [], []>} : vector<8x256xbf16>, vector<256x256xbf16>, vector<8x256xf32> -> vector<8x256xf32>
    %c0_9 = arith.constant 0 : index
    %c0_10 = arith.constant 0 : index
    %12 = vector.load %arg5[%c0_9, %c0_10] : memref<1x256xf32, #tpu.memory_space<vmem>>, vector<1x256xf32>
    %13 = vector.broadcast %12 : vector<1x256xf32> to vector<8x256xf32>
    %14 = arith.addf %11, %13 : vector<8x256xf32>
    %cst_11 = arith.constant 0.000000e+00 : f32
    %15 = vector.broadcast %cst_11 : f32 to vector<8x256xf32>
    %16 = arith.maximumf %14, %15 : vector<8x256xf32>
    %17 = arith.truncf %16 : vector<8x256xf32> to vector<8x256xbf16>
    %c0_12 = arith.constant 0 : index
    %c0_13 = arith.constant 0 : index
    %18 = vector.load %arg6[%c0_12, %c0_13] : memref<256x128xbf16, #tpu.memory_space<vmem>>, vector<256x128xbf16>
    %cst_14 = arith.constant dense<0.000000e+00> : vector<8x128xf32>
    %19 = tpu.matmul %17, %18, %cst_14 {dimension_numbers = #tpu.dot_dimension_numbers<[1], [0], [0], [1], [0, 0, 1, 1], [], []>} : vector<8x256xbf16>, vector<256x128xbf16>, vector<8x128xf32> -> vector<8x128xf32>
    %c0_15 = arith.constant 0 : index
    %c0_16 = arith.constant 0 : index
    %20 = vector.load %arg7[%c0_15, %c0_16] : memref<1x128xf32, #tpu.memory_space<vmem>>, vector<1x128xf32>
    %21 = vector.broadcast %20 : vector<1x128xf32> to vector<8x128xf32>
    %22 = arith.addf %19, %21 : vector<8x128xf32>
    %23 = vector.extract_strided_slice %22 {offsets = [0, 0], sizes = [8, 16], strides = [1, 1]} : vector<8x128xf32> to vector<8x16xf32>
    %c0_17 = arith.constant 0 : index
    %c0_18 = arith.constant 0 : index
    %24 = vector.load %arg8[%c0_17, %c0_18] : memref<8x16xf32, #tpu.memory_space<vmem>>, vector<8x16xf32>
    tpu.vector_store %arg8[%c0_17, %c0_18], %23 {strides = array<i32>} : memref<8x16xf32, #tpu.memory_space<vmem>>, vector<8x16xf32>,
    return
  }
  func.func @transform_0(%arg0: i32) -> (i32, i32) {
    %c0_i32 = arith.constant 0 : i32
    %c0_i32_0 = arith.constant 0 : i32
    return %arg0, %c0_i32 : i32, i32
  }
  func.func @transform_1(%arg0: i32) -> (i32, i32) {
    %c0_i32 = arith.constant 0 : i32
    %c0_i32_0 = arith.constant 0 : i32
    %c0_i32_1 = arith.constant 0 : i32
    return %c0_i32, %c0_i32_0 : i32, i32
  }
  func.func @transform_2(%arg0: i32) -> (i32, i32) {
    %c0_i32 = arith.constant 0 : i32
    %c0_i32_0 = arith.constant 0 : i32
    %c0_i32_1 = arith.constant 0 : i32
    return %c0_i32, %c0_i32_0 : i32, i32
  }
  func.func @transform_3(%arg0: i32) -> (i32, i32) {
    %c0_i32 = arith.constant 0 : i32
    %c0_i32_0 = arith.constant 0 : i32
    %c0_i32_1 = arith.constant 0 : i32
    return %c0_i32, %c0_i32_0 : i32, i32
  }
  func.func @transform_4(%arg0: i32) -> (i32, i32) {
    %c0_i32 = arith.constant 0 : i32
    %c0_i32_0 = arith.constant 0 : i32
    %c0_i32_1 = arith.constant 0 : i32
    return %c0_i32, %c0_i32_0 : i32, i32
  }
  func.func @transform_5(%arg0: i32) -> (i32, i32) {
    %c0_i32 = arith.constant 0 : i32
    %c0_i32_0 = arith.constant 0 : i32
    %c0_i32_1 = arith.constant 0 : i32
    return %c0_i32, %c0_i32_0 : i32, i32
  }
  func.func @transform_6(%arg0: i32) -> (i32, i32) {
    %c0_i32 = arith.constant 0 : i32
    %c0_i32_0 = arith.constant 0 : i32
    %c0_i32_1 = arith.constant 0 : i32
    return %c0_i32, %c0_i32_0 : i32, i32
  }
  func.func @transform_7(%arg0: i32) -> (i32, i32) {
    %c0_i32 = arith.constant 0 : i32
    %c0_i32_0 = arith.constant 0 : i32
    return %arg0, %c0_i32 : i32, i32
  }
}

</mosaic_0001>

<bundles_post_ra>
// kernel: _value_decoder_impl.1
= control target key start
LH: loop header
LB: loop body
LE: loop exit
PB: predicated region body
PF: predicated region fallthrough
CT: control target
= control target key end

     0   :  { %12 = vsyncpa [#allocation3], 0  ;;  %s1146_s0 = inlined_call_operand.hbm [shape: f32[8,64], index: 0, kind: input, shape index: {}]   ;;  %s1147_s1 = inlined_call_operand.hbm [shape: bf16[64,256], index: 1, kind: input, shape index: {}]   ;;  %s1148_s2 = inlined_call_operand.hbm [shape: f32[1,256], index: 2, kind: input, shape index: {}]   ;;  %s1149_s3 = inlined_call_operand.hbm [shape: bf16[256,256], index: 3, kind: input, shape index: {}]   ;;  %s1150_s4 = inlined_call_operand.vmem [shape: f32[1,256], index: 4, kind: input, shape index: {}]   ;;  %s1151_s5 = inlined_call_operand.hbm [shape: bf16[256,128], index: 5, kind: input, shape index: {}]   ;;  %s1152_s6 = inlined_call_operand.vmem [shape: f32[1,128], index: 6, kind: input, shape index: {}]   ;;  %s1153_s7 = inlined_call_operand.hbm [shape: f32[8,16], index: 7, kind: output, shape index: {}]  }
   0x1   :  { %13 = vsyncpa [#allocation6], 0 }
   0x2   :  { %14 = vsyncpa [#allocation9], 0  ;;  %s31_s26 = sshll.u32 %s1147_s1, 4  ;;  %s32_s26 = int_to_ptr.hbm [resolvable:$true] %s31_s26 }
   0x3   :  { %15 = vsyncpa [#allocation4], 0  ;;  %s1070_s27 = smov [#allocation5]   ;;  %s55_s8 = sshll.u32 %s1149_s3, 4  ;;  %s56_s8 = int_to_ptr.hbm [resolvable:$true] %s55_s8 }
   0x4   :  { %s33_s28 = sshll.u32 %s1070_s27, 4  ;;  %s1071_s9 = smov 128   ;;  %s34_s28 = int_to_ptr.vmem [resolvable:$true] %s33_s28 }
   0x5   :  { %s1072_s10 = smov 8   ;;  %s1073_s11 = smov [#allocation8]  }
   0x6   :  { %39 = dma.hbm_to_vmem [thread:$0]  %s32_s26, 1024, %s34_s28, [#allocation6], %s1071_s9, %s1071_s9, %s1072_s10  }
   0x7   :  { %s57_s12 = sshll.u32 %s1073_s11, 4  ;;  %s21_s15 = sshll.u32 %s1146_s0, 4  ;;  %s58_s12 = int_to_ptr.vmem [resolvable:$true] %s57_s12  ;;  %s22_s15 = int_to_ptr.hbm [resolvable:$true] %s21_s15 }
   0x8   :  { %63 = dma.hbm_to_vmem [thread:$0]  %s56_s8, 4096, %s58_s12, [#allocation9], %s1071_s9, %s1071_s9, %s1072_s10  }
   0x9   :  { %s45_s17 = sshll.u32 %s1148_s2, 4  ;;  %s1074_s18 = smov [#allocation2]   ;;  %s46_s17 = int_to_ptr.hbm [resolvable:$true] %s45_s17 }
   0xa   :  { %s23_s19 = sshll.u32 %s1074_s18, 4  ;;  %s1075_s3 = smov [#allocation7]   ;;  %s24_s19 = int_to_ptr.vmem [resolvable:$true] %s23_s19 }
   0xb   :  { %26 = dma.hbm_to_vmem [thread:$0]  %s22_s15, 128, %s24_s19, [#allocation3]  }
   0xc   :  { %s47_s20 = sshll.u32 %s1075_s3, 4  ;;  %s70_s23 = sshll.u32 %s1151_s5, 4  ;;  %s48_s20 = int_to_ptr.vmem [resolvable:$true] %s47_s20  ;;  %s71_s23 = int_to_ptr.hbm [resolvable:$true] %s70_s23 }
   0xd   :  { %50 = dma.hbm_to_vmem [thread:$0]  %s46_s17, 32, %s48_s20, [#allocation6]  }
   0xe   :  { %s1076_s0 = smov [#allocation10]   ;;  %s1077_s25 = smov 64  }
   0xf   :  { %s72_s24 = sshll.u32 %s1076_s0, 4  ;;  %s1078_s26 = smov 4   ;;  %s73_s24 = int_to_ptr.vmem [resolvable:$true] %s72_s24 }
  0x10   :  { %78 = dma.hbm_to_vmem [thread:$0]  %s71_s23, 2048, %s73_s24, [#allocation9], %s1077_s25, %s1077_s25, %s1078_s26  }
  0x11   :  { %1062 = dma.done.wait [#allocation3], 128  }
  0x12   :  { %1063 = vsyncadd [#allocation3], 4294967168 }
  0x13   :  { %1064 = dma.done.wait [#allocation6], 1056  }
  0x14   :  { %1065 = vsyncadd [#allocation6], 4294966240 }
  0x15   :  { %1066 = dma.done.wait [#allocation9], 6144  }
  0x16   :  { %1067 = vsyncadd [#allocation9], 4294961152  ;;  %v651_v0 = vld [vmem:[#allocation5 + $0x30] sm:$0xf]  ;;  %v858_v1 = vld [vmem:[#allocation5 + $0x34] sm:$0xf0] }
  0x17   :  { %v857_v2 = vld [vmem:[#allocation5 + $0x34] sm:$0xf]  ;;  %v652_v3 = vor.u32 %v858_v1, %v651_v0  ;;  %v653_v4 = vld [vmem:[#allocation5 + $0x38] sm:$0xf0]  ;;  %v643_v5 = vld [vmem:[#allocation5 + $0x20] sm:$0xf] }
  0x18   :  { %v856_v6 = vld [vmem:[#allocation5 + $0x24] sm:$0xf0]  ;;  %v656_v7 = vor.u32 %v857_v2, %v653_v4  ;;  %v855_v8 = vld [vmem:[#allocation5 + $0x24] sm:$0xf]  ;;  %v645_v9 = vld [vmem:[#allocation5 + $0x28] sm:$0xf0] }
  0x19   :  { %166 = vmatpush.bf16.msra.mxu0 %v652_v3  ;;  %v644_v10 = vor.u32 %v856_v6, %v643_v5  ;;  %v648_v11 = vor.u32 %v855_v8, %v645_v9  ;;  %v635_v12 = vld [vmem:[#allocation5 + $0x10] sm:$0xf]  ;;  %v854_v13 = vld [vmem:[#allocation5 + $0x14] sm:$0xf0]  ;;  %v853_v14 = vld [vmem:[#allocation5 + $0x14] sm:$0xf] }
  0x1a   :  { %179 = vmatpush.bf16.msra.mxu1 %v656_v7  ;;  %v637_v15 = vld [vmem:[#allocation5 + $0x18] sm:$0xf0]  ;;  %v717_v16 = vld [vmem:[#allocation8 + $0x70] sm:$0xf]  ;;  %v627_v17 = vld [vmem:[#allocation5] sm:$0xf]  ;;  %v636_v21 = vor.u32 %v854_v13, %v635_v12 }
  0x1b   :  { %v874_v18 = vld [vmem:[#allocation8 + $0x74] sm:$0xf0]  ;;  %v781_v19 = vld [vmem:[#allocation8 + $0xf0] sm:$0xf]  ;;  %v852_v22 = vld [vmem:[#allocation5 + $0x4] sm:$0xf0]  ;;  %v640_v27 = vor.u32 %v853_v14, %v637_v15 }
  0x1c   :  { %v890_v20 = vld [vmem:[#allocation8 + $0xf4] sm:$0xf0]  ;;  %v851_v23 = vld [vmem:[#allocation5 + $0x4] sm:$0xf]  ;;  %v629_v24 = vld [vmem:[#allocation5 + $0x8] sm:$0xf0]  ;;  %v718_v25 = vor.u32 %v874_v18, %v717_v16  ;;  %v628_v39 = vor.u32 %v852_v22, %v627_v17 }
  0x1d   :  { %167 = vmatpush.bf16.msra.mxu0 %v644_v10  ;;  %v782_v26 = vor.u32 %v890_v20, %v781_v19  ;;  %v873_v28 = vld [vmem:[#allocation8 + $0x74] sm:$0xf]  ;;  %v709_v29 = vld [vmem:[#allocation8 + $0x60] sm:$0xf]  ;;  %v872_v30 = vld [vmem:[#allocation8 + $0x64] sm:$0xf0]  ;;  %v632_v43 = vor.u32 %v851_v23, %v629_v24 }
  0x1e   :  { %180 = vmatpush.bf16.msra.mxu1 %v648_v11  ;;  %390 = vmatpush.bf16.msra.mxu2 %v718_v25  ;;  %v719_v31 = vld [vmem:[#allocation8 + $0x78] sm:$0xf0]  ;;  %v710_v32 = vor.u32 %v872_v30, %v709_v29  ;;  %v773_v33 = vld [vmem:[#allocation8 + $0xe0] sm:$0xf]  ;;  %v888_v34 = vld [vmem:[#allocation8 + $0xe4] sm:$0xf0] }
  0x1f   :  { %403 = vmatpush.bf16.msra.mxu3 %v782_v26  ;;  %v102_v35 = vld [vmem:[#allocation2] sm:$0xff]  ;;  %v774_v38 = vor.u32 %v888_v34, %v773_v33  ;;  %v701_v40 = vld [vmem:[#allocation8 + $0x50] sm:$0xf]  ;;  %v722_v44 = vor.u32 %v873_v28, %v719_v31  ;;  %v871_v47 = vld [vmem:[#allocation8 + $0x64] sm:$0xf]  ;;  %vm158_vm0 = vcmask 523264  }
  0x20   :  { %v889_v36 = vld [vmem:[#allocation8 + $0xf4] sm:$0xf]  ;;  %v783_v37 = vld [vmem:[#allocation8 + $0xf8] sm:$0xf0]  ;;  %v870_v41 = vld [vmem:[#allocation8 + $0x54] sm:$0xf0]  ;;  %v103_v51 = vpack.c.bf16 %v102_v35, %v102_v35 }
  0x21   :  { %168 = vmatpush.bf16.msra.mxu0 %v636_v21  ;;  %v765_v42 = vld [vmem:[#allocation8 + $0xd0] sm:$0xf]  ;;  %v886_v45 = vld [vmem:[#allocation8 + $0xd4] sm:$0xf0]  ;;  %v786_v46 = vor.u32 %v889_v36, %v783_v37  ;;  %v711_v48 = vld [vmem:[#allocation8 + $0x68] sm:$0xf0]  ;;  %v702_v50 = vor.u32 %v870_v41, %v701_v40 }
  0x22   :  { %181 = vmatpush.bf16.msra.mxu1 %v640_v27  ;;  %391 = vmatpush.bf16.msra.mxu2 %v710_v32  ;;  %v887_v49 = vld [vmem:[#allocation8 + $0xe4] sm:$0xf]  ;;  %v775_v52 = vld [vmem:[#allocation8 + $0xe8] sm:$0xf0]  ;;  %v766_v53 = vor.u32 %v886_v45, %v765_v42  ;;  %v693_v54 = vld [vmem:[#allocation8 + $0x40] sm:$0xf]  ;;  %v714_v58 = vor.u32 %v871_v47, %v711_v48 }
  0x23   :  { %404 = vmatpush.bf16.msra.mxu3 %v774_v38  ;;  %v868_v55 = vld [vmem:[#allocation8 + $0x44] sm:$0xf0]  ;;  %v757_v56 = vld [vmem:[#allocation8 + $0xc0] sm:$0xf]  ;;  %v778_v59 = vor.u32 %v887_v49, %v775_v52  ;;  %v869_v60 = vld [vmem:[#allocation8 + $0x54] sm:$0xf] }
  0x24   :  { %v884_v57 = vld [vmem:[#allocation8 + $0xc4] sm:$0xf0]  ;;  %v703_v61 = vld [vmem:[#allocation8 + $0x58] sm:$0xf0]  ;;  %v885_v62 = vld [vmem:[#allocation8 + $0xd4] sm:$0xf]  ;;  %v694_v63 = vor.u32 %v868_v55, %v693_v54 }
  0x25   :  { %169 = vmatpush.bf16.msra.mxu0 %v628_v39  ;;  %v767_v0 = vld [vmem:[#allocation8 + $0xd8] sm:$0xf0]  ;;  %v758_v1 = vor.u32 %v884_v57, %v757_v56  ;;  %v685_v2 = vld [vmem:[#allocation8 + $0x30] sm:$0xf]  ;;  %v866_v3 = vld [vmem:[#allocation8 + $0x34] sm:$0xf0]  ;;  %v706_v6 = vor.u32 %v869_v60, %v703_v61 }
  0x26   :  { %182 = vmatpush.bf16.msra.mxu1 %v632_v43  ;;  %392 = vmatpush.bf16.msra.mxu2 %v702_v50  ;;  %v749_v4 = vld [vmem:[#allocation8 + $0xb0] sm:$0xf]  ;;  %v882_v5 = vld [vmem:[#allocation8 + $0xb4] sm:$0xf0]  ;;  %v867_v7 = vld [vmem:[#allocation8 + $0x44] sm:$0xf]  ;;  %v770_v8 = vor.u32 %v885_v62, %v767_v0  ;;  %v686_v12 = vor.u32 %v866_v3, %v685_v2 }
  0x27   :  { %405 = vmatpush.bf16.msra.mxu3 %v766_v53  ;;  %v695_v9 = vld [vmem:[#allocation8 + $0x48] sm:$0xf0]  ;;  %v883_v10 = vld [vmem:[#allocation8 + $0xc4] sm:$0xf]  ;;  %v750_v13 = vor.u32 %v882_v5, %v749_v4  ;;  %v677_v14 = vld [vmem:[#allocation8 + $0x20] sm:$0xf] }
  0x28   :  { %657 = vmatmul.msk.bf16.vlgmr.msra.gmra.mxu0 %vm158_vm0, %v103_v51  ;;  %v759_v11 = vld [vmem:[#allocation8 + $0xc8] sm:$0xf0]  ;;  %v864_v15 = vld [vmem:[#allocation8 + $0x24] sm:$0xf0]  ;;  %v741_v16 = vld [vmem:[#allocation8 + $0xa0] sm:$0xf]  ;;  %v698_v18 = vor.u32 %v867_v7, %v695_v9 }
  0x29   :  { %416 = vmatpush.bf16.msrb.mxu0 %v722_v44  ;;  %658 = vmatmul.msk.bf16.vlgmr.msra.gmra.mxu1 %vm158_vm0, %v103_v51  ;;  %v880_v17 = vld [vmem:[#allocation8 + $0xa4] sm:$0xf0]  ;;  %v762_v19 = vor.u32 %v883_v10, %v759_v11  ;;  %v865_v20 = vld [vmem:[#allocation8 + $0x34] sm:$0xf]  ;;  %v687_v21 = vld [vmem:[#allocation8 + $0x38] sm:$0xf0]  ;;  %v678_v22 = vor.u32 %v864_v15, %v677_v14 }
  0x2a   :  { %429 = vmatpush.bf16.msrb.mxu1 %v786_v46  ;;  %393 = vmatpush.bf16.msra.mxu2 %v694_v63  ;;  %v881_v23 = vld [vmem:[#allocation8 + $0xb4] sm:$0xf]  ;;  %v751_v24 = vld [vmem:[#allocation8 + $0xb8] sm:$0xf0]  ;;  %v742_v25 = vor.u32 %v880_v17, %v741_v16  ;;  %v690_v26 = vor.u32 %v865_v20, %v687_v21  ;;  %v863_v28 = vld [vmem:[#allocation8 + $0x24] sm:$0xf] }
  0x2b   :  { %406 = vmatpush.bf16.msra.mxu3 %v758_v1  ;;  %v754_v27 = vor.u32 %v881_v23, %v751_v24  ;;  %v679_v29 = vld [vmem:[#allocation8 + $0x28] sm:$0xf0]  ;;  %v879_v30 = vld [vmem:[#allocation8 + $0xa4] sm:$0xf]  ;;  %v669_v34 = vld [vmem:[#allocation8 + $0x10] sm:$0xf] }
  0x2c   :  { %v743_v31 = vld [vmem:[#allocation8 + $0xa8] sm:$0xf0]  ;;  %v682_v32 = vor.u32 %v863_v28, %v679_v29  ;;  %v862_v35 = vld [vmem:[#allocation8 + $0x14] sm:$0xf0]  ;;  %v733_v36 = vld [vmem:[#allocation8 + $0x90] sm:$0xf] }
  0x2d   :  { %417 = vmatpush.bf16.msrb.mxu0 %v714_v58  ;;  %v746_v33 = vor.u32 %v879_v30, %v743_v31  ;;  %v670_v37 = vor.u32 %v862_v35, %v669_v34  ;;  %v878_v38 = vld [vmem:[#allocation8 + $0x94] sm:$0xf0]  ;;  %v861_v39 = vld [vmem:[#allocation8 + $0x14] sm:$0xf]  ;;  %v671_v40 = vld [vmem:[#allocation8 + $0x18] sm:$0xf0] }
  0x2e   :  { %430 = vmatpush.bf16.msrb.mxu1 %v778_v59  ;;  %394 = vmatpush.bf16.msra.mxu2 %v686_v12  ;;  %v734_v41 = vor.u32 %v878_v38, %v733_v36  ;;  %v674_v42 = vor.u32 %v861_v39, %v671_v40  ;;  %v877_v43 = vld [vmem:[#allocation8 + $0x94] sm:$0xf]  ;;  %v735_v44 = vld [vmem:[#allocation8 + $0x98] sm:$0xf0]  ;;  %v661_v46 = vld [vmem:[#allocation8] sm:$0xf] }
  0x2f   :  { %407 = vmatpush.bf16.msra.mxu3 %v750_v13  ;;  %v738_v45 = vor.u32 %v877_v43, %v735_v44  ;;  %v860_v47 = vld [vmem:[#allocation8 + $0x4] sm:$0xf0]  ;;  %v725_v48 = vld [vmem:[#allocation8 + $0x80] sm:$0xf]  ;;  %v859_v51 = vld [vmem:[#allocation8 + $0x4] sm:$0xf] }
  0x30   :  { %v662_v49 = vor.u32 %v860_v47, %v661_v46  ;;  %v876_v50 = vld [vmem:[#allocation8 + $0x84] sm:$0xf0]  ;;  %v663_v52 = vld [vmem:[#allocation8 + $0x8] sm:$0xf0]  ;;  %v875_v55 = vld [vmem:[#allocation8 + $0x84] sm:$0xf] }
  0x31   :  { %418 = vmatpush.bf16.msrb.mxu0 %v706_v6  ;;  %v726_v53 = vor.u32 %v876_v50, %v725_v48  ;;  %v666_v54 = vor.u32 %v859_v51, %v663_v52  ;;  %v727_v56 = vld [vmem:[#allocation8 + $0x88] sm:$0xf0]  ;;  %v906_v58 = vld [vmem:[#allocation10 + $0x78] sm:$0xff]  ;;  %v905_v60 = vld [vmem:[#allocation10 + $0x70] sm:$0xff]  ;;  %s1079_s28 = smov [#allocation11]   ;;  %s613_s9 = sshll.u32 %s1153_s7, 4  ;;  %s614_s9 = int_to_ptr.hbm [resolvable:$true] %s613_s9 }
  0x32   :  { %431 = vmatpush.bf16.msrb.mxu1 %v770_v8  ;;  %395 = vmatpush.bf16.msra.mxu2 %v678_v22  ;;  %v730_v57 = vor.u32 %v875_v55, %v727_v56  ;;  %v898_v59 = vld [vmem:[#allocation10 + $0x38] sm:$0xff]  ;;  %v897_v61 = vld [vmem:[#allocation10 + $0x30] sm:$0xff]  ;;  %v904_v62 = vld [vmem:[#allocation10 + $0x68] sm:$0xff]  ;;  %s611_s29 = sshll.u32 %s1079_s28, 4  ;;  %vm604_vm1 = vcmask 130048   ;;  %s612_s29 = int_to_ptr.vmem [resolvable:$true] %s611_s29 }
  0x33   :  { %408 = vmatpush.bf16.msra.mxu3 %v742_v25  ;;  %v896_v63 = vld [vmem:[#allocation10 + $0x28] sm:$0xff]  ;;  %v903_v0 = vld [vmem:[#allocation10 + $0x60] sm:$0xff]  ;;  %v902_v2 = vld [vmem:[#allocation10 + $0x58] sm:$0xff] }
  0x34   :  { %v895_v1 = vld [vmem:[#allocation10 + $0x20] sm:$0xff]  ;;  %v112_v3 = vld [vmem:[#allocation7] sm:$0x3]  ;;  %v901_v4 = vld [vmem:[#allocation10 + $0x50] sm:$0xff] }
  0x35   :  { %419 = vmatpush.bf16.msrb.mxu0 %v698_v18  ;;  %v114_v5 = vperm.slane %v112_v3, 0  ;;  %v115_v6 = vperm.slane %v112_v3, 1  ;;  %v894_v17 = vld [vmem:[#allocation10 + $0x18] sm:$0xff]  ;;  %v900_v18 = vld [vmem:[#allocation10 + $0x48] sm:$0xff]  ;;  %v899_v20 = vld [vmem:[#allocation10 + $0x40] sm:$0xff] }
  0x36   :  { %432 = vmatpush.bf16.msrb.mxu1 %v762_v19  ;;  %396 = vmatpush.bf16.msra.mxu2 %v670_v37  ;;  %v893_v19 = vld [vmem:[#allocation10 + $0x10] sm:$0xff]  ;;  %v892_v21 = vld [vmem:[#allocation10 + $0x8] sm:$0xff]  ;;  %v891_v22 = vld [vmem:[#allocation10] sm:$0xff] }
  0x37   :  { %409 = vmatpush.bf16.msra.mxu3 %v734_v41  ;;  %v224_v23 = vld [vmem:[%s1150_s4] sm:$0x3] }
  0x38   :  { %v227_v24 = vperm.slane %v224_v23, 1  ;;  %v226_v29 = vperm.slane %v224_v23, 0  ;;  %v917_v43 = vld [vmem:[%s1152_s6] ss:$0 sm:$0xff] }
  0x39   :  { %420 = vmatpush.bf16.msrb.mxu0 %v690_v26 }
  0x3a   :  { %433 = vmatpush.bf16.msrb.mxu1 %v754_v27  ;;  %397 = vmatpush.bf16.msra.mxu2 %v662_v49 }
  0x3b   :  { %410 = vmatpush.bf16.msra.mxu3 %v726_v53 }
  0x3d   :  { %421 = vmatpush.bf16.msrb.mxu0 %v682_v32 }
  0x3e   :  { %434 = vmatpush.bf16.msrb.mxu1 %v746_v33  ;;  %578 = vmatpush.bf16.msrb.mxu2 %v898_v59 }
  0x3f   :  { %591 = vmatpush.bf16.msrb.mxu3 %v906_v58 }
  0x41   :  { %422 = vmatpush.bf16.msrb.mxu0 %v674_v42 }
  0x42   :  { %435 = vmatpush.bf16.msrb.mxu1 %v738_v45  ;;  %579 = vmatpush.bf16.msrb.mxu2 %v897_v61 }
  0x43   :  { %592 = vmatpush.bf16.msrb.mxu3 %v905_v60 }
  0x45   :  { %423 = vmatpush.bf16.msrb.mxu0 %v666_v54 }
  0x46   :  { %436 = vmatpush.bf16.msrb.mxu1 %v730_v57  ;;  %580 = vmatpush.bf16.msrb.mxu2 %v896_v63 }
  0x47   :  { %593 = vmatpush.bf16.msrb.mxu3 %v904_v62 }
  0x4a   :  { %581 = vmatpush.bf16.msrb.mxu2 %v895_v1 }
  0x4b   :  { %594 = vmatpush.bf16.msrb.mxu3 %v903_v0 }
  0x4e   :  { %582 = vmatpush.bf16.msrb.mxu2 %v894_v17 }
  0x4f   :  { %595 = vmatpush.bf16.msrb.mxu3 %v902_v2 }
  0x52   :  { %583 = vmatpush.bf16.msrb.mxu2 %v893_v19 }
  0x53   :  { %596 = vmatpush.bf16.msrb.mxu3 %v901_v4 }
  0x56   :  { %584 = vmatpush.bf16.msrb.mxu2 %v892_v21 }
  0x57   :  { %597 = vmatpush.bf16.msrb.mxu3 %v900_v18 }
  0x5a   :  { %585 = vmatpush.bf16.msrb.mxu2 %v891_v22 }
  0x5b   :  { %598 = vmatpush.bf16.msrb.mxu3 %v899_v20 }
  0xa5   :  { %v171_v7 = vpop.f32.mrf.mxu0 }
  0xa6   :  { %v172_v8 = vadd.f32 %v171_v7, %v114_v5  ;;  %v184_v9 = vpop.f32.mrf.mxu1 }
  0xa7   :  { %v185_v10 = vadd.f32 %v184_v9, %v115_v6 }
  0xa8   :  { %v188_v11 = vmax.f32 %v172_v8, 0.0 }
  0xa9   :  { %v189_v12 = vmax.f32 %v185_v10, 0.0 }
  0xaa   :  { %v190_v13 = vpack.c.bf16 %v188_v11, %v188_v11 }
  0xab   :  { %v191_v14 = vpack.c.bf16 %v189_v12, %v189_v12 }
  0xac   :  { %398 = vmatmul.bf16.vlgmr.msra.gmra.mxu2 %v190_v13  ;;  %424 = vmatmul.bf16.vlgmr.msrb.gmra.mxu0 %v190_v13 }
  0xad   :  { %411 = vmatmul.bf16.vlgmr.msra.gmra.mxu3 %v191_v14  ;;  %437 = vmatmul.bf16.vlgmr.msrb.gmra.mxu1 %v191_v14  ;;  %v173_v15 = vpop.f32.mrf.mxu0 }
  0xae   :  { %v186_v16 = vpop.f32.mrf.mxu1 }
 0x129   :  { %v425_v25 = vpop.f32.mrf.mxu0 }
 0x12a   :  { %v426_v26 = vadd.f32 %v425_v25, %v227_v24  ;;  %v438_v27 = vpop.f32.mrf.mxu1 }
 0x12c   :  { %v439_v28 = vadd.f32 %v438_v27, %v426_v26 }
 0x12e   :  { %v443_v30 = vmax.f32 %v439_v28, 0.0 }
 0x12f   :  { %v399_v31 = vpop.f32.mrf.mxu2 }
 0x130   :  { %v445_v32 = vpack.c.bf16 %v443_v30, %v443_v30  ;;  %v400_v33 = vadd.f32 %v399_v31, %v226_v29  ;;  %v412_v34 = vpop.f32.mrf.mxu3 }
 0x131   :  { %v427_v35 = vpop.f32.mrf.mxu0 }
 0x132   :  { %v413_v36 = vadd.f32 %v412_v34, %v400_v33  ;;  %v440_v37 = vpop.f32.mrf.mxu1  ;;  %599 = vmatmul.bf16.vlgmr.msrb.gmra.mxu3 %v445_v32 }
 0x134   :  { %v442_v38 = vmax.f32 %v413_v36, 0.0 }
 0x136   :  { %v444_v39 = vpack.c.bf16 %v442_v38, %v442_v38 }
 0x137   :  { %v401_v40 = vpop.f32.mrf.mxu2 }
 0x138   :  { %v414_v41 = vpop.f32.mrf.mxu3  ;;  %586 = vmatmul.bf16.vlgmr.msrb.gmra.mxu2 %v444_v39 }
 0x1b5   :  { %v600_v42 = vpop.f32.mrf.mxu3 }
 0x1bb   :  { %v587_v44 = vpop.f32.mrf.mxu2 }
 0x1bc   :  { %v588_v45 = vadd.f32 %v917_v43, %v587_v44 }
 0x1bd   :  { %v602_v46 = vpop.f32.mrf.mxu3 }
 0x1be   :  { %v601_v47 = vadd.f32 %v600_v42, %v588_v45 }
 0x1c0   :  { %605 = vst.msk [vmem:[#allocation11] sm:$0xff] %vm604_vm1, %v601_v47 }
 0x1c1   :  { %616 = dma.vmem_to_hbm [thread:$0]  %s612_s29, 128, %s614_s9, [#allocation4]  }
 0x1c3   :  { %v589_v48 = vpop.f32.mrf.mxu2 }
 0x1c4   :  { %1068 = dma.done.wait [#allocation4], 128  }
 0x1c5   :  { %1069 = vsyncadd [#allocation4], 4294967168 }
 0x1c6   :  { %621 = vsyncpa [#allocation3], 1 }
 0x1c7   :  { %622 = vsyncpa [#allocation6], 1 }
 0x1c8   :  { %623 = vsyncpa [#allocation9], 1 }
 0x1c9   :  { %624 = vsyncpa [#allocation4], 1 }

</bundles_post_ra>
